<compile_context>
chip_gen: v5e
topology: v5e:2x2
jax: 0.10.0
libtpu: 0.0.40
codegen_flags: <defaults>
</compile_context>

<pallas_src>
import functools
import numpy as np
import jax
import jax.numpy as jnp
from jax.experimental import pallas as pl
from jax.experimental.pallas import tpu as pltpu


# ----------------------------- config ---------------------------------------
IN_DIM = 4
N_HEADS = 2
KEY_DIM = 8
MEMORY_DIM = 16
HEAD_DIM = 8
OUT_DIM = 24                 # != N_HEADS * HEAD_DIM  ->  to_out conv exists
MAX_PIXELS_PER_STEP = 8192   # lane-axis pixels per grid step (multiple of 128)
MAX_BATCH_FOLD = 8           # bounds the in-kernel unroll when folding batch


def _largest_divisor(n, cap):
    cap = max(1, min(n, cap))
    for d in range(cap, 0, -1):
        if n % d == 0:
            return d
    return 1


# ----------------------------- kernel ---------------------------------------
def _kcm_kernel(x_ref, wk_ref, bk_ref, wo_ref, o_ref, *,
                n_heads, memory_dim, approx_recip):
    # x_ref:  (Bb, Cin, T)        io dtype (bf16 or f32), pixels on lanes
    # wk_ref: (nh*md, Cin)        compute dtype (pre-composed key.T @ conv1 W)
    # bk_ref: (nh*md, 1)          f32        (pre-composed key.T @ conv1 bias)
    # wo_ref: (out_dim, nh*md)    compute dtype (to_out @ memory.T, b2 folded in)
    # o_ref:  (Bb, out_dim, T)
    wk = wk_ref[...]
    bk = bk_ref[...]
    wo = wo_ref[...]
    bb_n = x_ref.shape[0]
    t = x_ref.shape[2]

    for bb in range(bb_n):                       # small, statically unrolled
        x = x_ref[bb]                            # (Cin, T) -- no upcast: MXU eats bf16
        # matmul 1: fused (to_mem_key conv  +  key einsum), f32 accumulation
        s = jnp.dot(wk, x, preferred_element_type=jnp.float32) + bk   # (nh*md, T)

        # joint-head softmax over the memory axis (sublane-aligned view)
        s4 = s.reshape(n_heads, memory_dim, t)                        # (nh, md, T)
        m = jnp.max(s4, axis=1, keepdims=True)                        # XLU
        e = jnp.exp(s4 - m)                                           # EUP
        denom = jnp.sum(e, axis=1, keepdims=True)                     # XLU
        inv = pl.reciprocal(denom, approx=approx_recip)               # EUP
        p = (e * inv).reshape(n_heads * memory_dim, t).astype(wo.dtype)

        # matmul 2: fused (memory einsum + to_out conv); b2 already folded in Wo
        o = jnp.dot(wo, p, preferred_element_type=jnp.float32)        # (out_dim, T)
        o_ref[bb] = o.astype(o_ref.dtype)        # single lane-dense store


# ----------------------------- wrapper ---------------------------------------
def key_channelwise_memory_multihead(x, w1_t, b1_t, key_p, mem_p, w2_t=None,
                                     b2_t=None, *, n_heads=N_HEADS,
                                     key_dim=KEY_DIM, io_dtype=jnp.bfloat16,
                                     max_pixels=MAX_PIXELS_PER_STEP):
    """x: (B, in_dim, H, W) NCHW.  Returns (B, out_dim, H, W) in io_dtype."""
    assert max_pixels % 128 == 0
    B, Cin, H, W = x.shape
    HW = H * W
    memory_dim = key_p.shape[2]
    head_dim = mem_p.shape[2]
    nhmd = n_heads * memory_dim
    f32 = jnp.float32
    compute_dtype = io_dtype
    approx_recip = jnp.dtype(io_dtype) != jnp.dtype(jnp.float32)

    # ---- tile / grid selection ----------------------------------------------
    if HW <= max_pixels:
        tile_hw, hw_pad = HW, HW
        bb = _largest_divisor(B, min(MAX_BATCH_FOLD, max(1, max_pixels // HW)))
    else:
        tile_hw = max_pixels                         # multiple of 128
        hw_pad = -(-HW // tile_hw) * tile_hw         # lane padding for ragged HW
        bb = 1
    hw_steps = hw_pad // tile_hw
    # v7x has 2 TensorCores: keep >= 2 grid steps when the batch allows it
    # (no-op on v5e/v6e, which run the grid on a single core).
    if (B // bb) * hw_steps < 2 and B > 1:
        bb = _largest_divisor(B, B // 2)

    # NCHW -> (B, Cin, HW): pure reshape, no transpose / extra HBM pass.
    x_rows = x.reshape(B, Cin, HW).astype(io_dtype)
    if hw_pad != HW:
        x_rows = jnp.pad(x_rows, ((0, 0), (0, 0), (0, hw_pad - HW)))

    # ---- one-time parameter composition (tiny matrices, done in f32) --------
    # conv channel (k*n_heads + n) is (head n, key k) under 'b (c m) h w -> b m c h w'
    perm = np.array([k * n_heads + n for n in range(n_heads) for k in range(key_dim)])
    w1 = jnp.asarray(w1_t, f32)[perm, :]                       # (nh*kd, Cin)
    b1 = jnp.asarray(b1_t, f32)[perm]                          # (nh*kd,)
    w1h = w1.reshape(n_heads, key_dim, Cin)
    b1h = b1.reshape(n_heads, key_dim)
    keyT = jnp.swapaxes(jnp.asarray(key_p, f32), 1, 2)         # (nh, md, kd)
    wk = jnp.einsum('nmk,nkc->nmc', keyT, w1h).reshape(nhmd, Cin)
    bk = jnp.einsum('nmk,nk->nm', keyT, b1h).reshape(nhmd, 1)

    memT = jnp.swapaxes(jnp.asarray(mem_p, f32), 1, 2)         # (nh, hd, md)
    if w2_t is None:
        out_dim = n_heads * head_dim                            # to_out is identity
        w2 = jnp.eye(out_dim, dtype=f32)
        b2 = jnp.zeros((out_dim,), dtype=f32)
    else:
        out_dim = w2_t.shape[0]
        w2 = jnp.asarray(w2_t, f32).reshape(out_dim, n_heads * head_dim)
        b2 = jnp.asarray(b2_t, f32).reshape(out_dim)
    # to_out columns are head-major ('b m c h w -> b (m c) h w'); split per head
    w2h = jnp.transpose(w2.reshape(out_dim, n_heads, head_dim), (1, 0, 2))
    wo = jnp.einsum('noh,nhm->nom', w2h, memT)                 # (nh, out, md)
    wo = jnp.transpose(wo, (1, 0, 2)).reshape(out_dim, nhmd)
    # Fold b2: each head's softmax column sums to 1  =>  sum(p) = n_heads.
    wo = wo + b2[:, None] / n_heads

    wk = wk.astype(compute_dtype)
    wo = wo.astype(compute_dtype)

    kernel = functools.partial(_kcm_kernel, n_heads=n_heads,
                               memory_dim=memory_dim, approx_recip=approx_recip)

    out_rows = pl.pallas_call(
        kernel,
        out_shape=jax.ShapeDtypeStruct((B, out_dim, hw_pad), io_dtype),
        grid_spec=pltpu.PrefetchScalarGridSpec(
            num_scalar_prefetch=0,
            grid=(B // bb, hw_steps),
            in_specs=[
                pl.BlockSpec((bb, Cin, tile_hw), lambda b, i: (b, 0, i)),
                pl.BlockSpec((nhmd, Cin), lambda b, i: (0, 0)),
                pl.BlockSpec((nhmd, 1), lambda b, i: (0, 0)),
                pl.BlockSpec((out_dim, nhmd), lambda b, i: (0, 0)),
            ],
            out_specs=pl.BlockSpec((bb, out_dim, tile_hw), lambda b, i: (b, 0, i)),
        ),
        compiler_params=pltpu.CompilerParams(
            dimension_semantics=("parallel", "parallel")),
    )(x_rows, wk, bk, wo)

    if hw_pad != HW:
        out_rows = out_rows[..., :HW]
    # (B, out_dim, HW) -> NCHW: reshape only, no transpose.
    return out_rows.reshape(B, out_dim, H, W)


# ----------------------------- pure-JAX reference ----------------------------
def reference(x, w1_t, b1_t, key_p, mem_p, w2_t, b2_t, *, n_heads=N_HEADS,
              key_dim=KEY_DIM):
    B, Cin, H, W = x.shape
    out = jnp.einsum('oi,bihw->bohw', w1_t.reshape(-1, Cin), x) \
        + b1_t[None, :, None, None]
    # rearrange 'b (c m) h w -> b m c h w', m = n_heads
    out = out.reshape(B, key_dim, n_heads, H, W).transpose(0, 2, 1, 3, 4)
    out = jnp.einsum('nki,bnkhw->bnihw', key_p, out)
    out = jax.nn.softmax(out, axis=2)
    out = jnp.einsum('nki,bnkhw->bnihw', mem_p, out)
    # rearrange 'b m c h w -> b (m c) h w'
    out = out.reshape(B, n_heads * mem_p.shape[2], H, W)
    if w2_t is not None:
        out = jnp.einsum('oi,bihw->bohw', w2_t.reshape(w2_t.shape[0], -1), out) \
            + b2_t[None, :, None, None]
    return out


# ----------------------------- main ------------------------------------------
if __name__ == "__main__":
    B, H, W = 2, 16, 16
    rng = jax.random.PRNGKey(0)
    keys = jax.random.split(rng, 8)

    x = jax.random.normal(keys[0], (B, IN_DIM, H, W), dtype=jnp.float32)

    # module parameters (deterministic, matching __init__ shapes)
    key_p = jax.random.uniform(keys[1], (N_HEADS, KEY_DIM, MEMORY_DIM),
                               dtype=jnp.float32)                        # torch.rand
    mem_p = jax.random.uniform(keys[2], (N_HEADS, MEMORY_DIM, HEAD_DIM),
                               dtype=jnp.float32) * 0.5 - 0.25           # rand*0.5-0.25
    # to_mem_key: Conv2d(IN_DIM -> N_HEADS*KEY_DIM, 1x1, bias)
    w1_t = jax.random.normal(keys[3], (N_HEADS * KEY_DIM, IN_DIM),
                             dtype=jnp.float32) * 0.1
    b1_t = jax.random.normal(keys[4], (N_HEADS * KEY_DIM,), dtype=jnp.float32) * 0.1
    # to_out: Conv2d(N_HEADS*HEAD_DIM -> OUT_DIM, 1x1, bias)
    w2_t = jax.random.normal(keys[5], (OUT_DIM, N_HEADS * HEAD_DIM),
                             dtype=jnp.float32) * 0.1
    b2_t = jax.random.normal(keys[6], (OUT_DIM,), dtype=jnp.float32) * 0.1

    ref = jax.block_until_ready(reference(x, w1_t, b1_t, key_p, mem_p, w2_t, b2_t))

    # 1) f32 HBM I/O path (f32 weights, exact reciprocal): tight validation.
    out_f32 = jax.block_until_ready(
        key_channelwise_memory_multihead(x, w1_t, b1_t, key_p, mem_p, w2_t, b2_t,
                                         io_dtype=jnp.float32))
    assert out_f32.shape == (B, OUT_DIM, H, W), out_f32.shape
    np.testing.assert_allclose(np.asarray(out_f32), np.asarray(ref),
                               rtol=2e-3, atol=2e-3)

    # 2) bf16 HBM I/O path (bandwidth/MXU-optimized config): compare against the
    #    reference evaluated on the same bf16-quantized input.
    out_bf16 = jax.block_until_ready(
        key_channelwise_memory_multihead(x, w1_t, b1_t, key_p, mem_p, w2_t, b2_t,
                                         io_dtype=jnp.bfloat16))
    assert out_bf16.shape == (B, OUT_DIM, H, W), out_bf16.shape
    ref_bf = reference(x.astype(jnp.bfloat16).astype(jnp.float32),
                       w1_t, b1_t, key_p, mem_p, w2_t, b2_t)
    np.testing.assert_allclose(np.asarray(out_bf16.astype(jnp.float32)),
                               np.asarray(ref_bf), rtol=2e-2, atol=2e-2)

    # 3) to_out = None branch (out_dim == n_heads * head_dim) on the f32 path.
    out_id = jax.block_until_ready(
        key_channelwise_memory_multihead(x, w1_t, b1_t, key_p, mem_p, None, None,
                                         io_dtype=jnp.float32))
    ref_id = reference(x, w1_t, b1_t, key_p, mem_p, None, None)
    assert out_id.shape == (B, N_HEADS * HEAD_DIM, H, W), out_id.shape
    np.testing.assert_allclose(np.asarray(out_id), np.asarray(ref_id),
                               rtol=2e-3, atol=2e-3)

    print("KERNEL_OK")
</pallas_src>

<mosaic_0001>
module attributes {stable_mosaic.version = 11 : i64} {
  func.func @_kcm_kernel(%arg0: i32, %arg1: i32, %arg2: memref<1x4x256xf32, #tpu.memory_space<vmem>>, %arg3: memref<32x4xf32, #tpu.memory_space<vmem>>, %arg4: memref<32x1xf32, #tpu.memory_space<vmem>>, %arg5: memref<24x32xf32, #tpu.memory_space<vmem>>, %arg6: memref<1x24x256xf32, #tpu.memory_space<vmem>>) attributes {dimension_semantics = [#tpu.dimension_semantics<parallel>, #tpu.dimension_semantics<parallel>], iteration_bounds = array<i64: 2, 1>, scalar_prefetch = 0 : i64, scratch_operands = 0 : i64, tpu.core_type = #tpu.core_type<tc>, window_params = [{transform_indices = @transform_0, window_bounds = array<i64: 1, 4, 256>}, {pipeline_mode = #tpu.pipeline_mode<synchronous>, transform_indices = @transform_1, window_bounds = array<i64: 32, 4>}, {pipeline_mode = #tpu.pipeline_mode<synchronous>, transform_indices = @transform_2, window_bounds = array<i64: 32, 1>}, {pipeline_mode = #tpu.pipeline_mode<synchronous>, transform_indices = @transform_3, window_bounds = array<i64: 24, 32>}, {transform_indices = @transform_4, window_bounds = array<i64: 1, 24, 256>}]} {
    %c0 = arith.constant 0 : index
    %c0_0 = arith.constant 0 : index
    %0 = vector.load %arg3[%c0, %c0_0] : memref<32x4xf32, #tpu.memory_space<vmem>>, vector<32x4xf32>
    %c0_1 = arith.constant 0 : index
    %c0_2 = arith.constant 0 : index
    %1 = vector.load %arg4[%c0_1, %c0_2] : memref<32x1xf32, #tpu.memory_space<vmem>>, vector<32x1xf32>
    %c0_3 = arith.constant 0 : index
    %c0_4 = arith.constant 0 : index
    %2 = vector.load %arg5[%c0_3, %c0_4] : memref<24x32xf32, #tpu.memory_space<vmem>>, vector<24x32xf32>
    %c0_5 = arith.constant 0 : index
    %c0_6 = arith.constant 0 : index
    %c0_7 = arith.constant 0 : index
    %3 = vector.load %arg2[%c0_5, %c0_6, %c0_7] : memref<1x4x256xf32, #tpu.memory_space<vmem>>, vector<1x4x256xf32>
    %4 = vector.shape_cast %3 : vector<1x4x256xf32> to vector<4x256xf32>
    %cst = arith.constant dense<0.000000e+00> : vector<32x256xf32>
    %5 = tpu.matmul %0, %4, %cst {dimension_numbers = #tpu.dot_dimension_numbers<[1], [0], [0], [1], [0, 0, 1, 1], [], []>} : vector<32x4xf32>, vector<4x256xf32>, vector<32x256xf32> -> vector<32x256xf32>
    %6 = vector.broadcast %1 : vector<32x1xf32> to vector<32x256xf32>
    %7 = arith.addf %5, %6 : vector<32x256xf32>
    %8 = vector.shape_cast %7 : vector<32x256xf32> to vector<2x16x256xf32>
    %cst_8 = arith.constant dense<0xFF800000> : vector<2x256xf32>
    %9 = vector.multi_reduction <maximumf>, %8, %cst_8 [1] : vector<2x16x256xf32> to vector<2x256xf32>
    %10 = vector.shape_cast %9 : vector<2x256xf32> to vector<2x1x256xf32>
    %11 = vector.broadcast %10 : vector<2x1x256xf32> to vector<2x16x256xf32>
    %12 = arith.subf %8, %11 : vector<2x16x256xf32>
    %13 = math.exp %12 : vector<2x16x256xf32>
    %cst_9 = arith.constant dense<0.000000e+00> : vector<2x256xf32>
    %14 = vector.multi_reduction <add>, %13, %cst_9 [1] : vector<2x16x256xf32> to vector<2x256xf32>
    %15 = vector.shape_cast %14 : vector<2x256xf32> to vector<2x1x256xf32>
    %16 = tpu.reciprocal %15 : vector<2x1x256xf32> -> vector<2x1x256xf32>
    %17 = vector.broadcast %16 : vector<2x1x256xf32> to vector<2x16x256xf32>
    %18 = arith.mulf %13, %17 : vector<2x16x256xf32>
    %19 = vector.shape_cast %18 : vector<2x16x256xf32> to vector<32x256xf32>
    %cst_10 = arith.constant dense<0.000000e+00> : vector<24x256xf32>
    %20 = tpu.matmul %2, %19, %cst_10 {dimension_numbers = #tpu.dot_dimension_numbers<[1], [0], [0], [1], [0, 0, 1, 1], [], []>} : vector<24x32xf32>, vector<32x256xf32>, vector<24x256xf32> -> vector<24x256xf32>
    %c0_11 = arith.constant 0 : index
    %c0_12 = arith.constant 0 : index
    %c0_13 = arith.constant 0 : index
    %21 = vector.load %arg6[%c0_11, %c0_12, %c0_13] : memref<1x24x256xf32, #tpu.memory_space<vmem>>, vector<1x24x256xf32>
    %22 = vector.shape_cast %21 : vector<1x24x256xf32> to vector<24x256xf32>
    %23 = vector.shape_cast %20 : vector<24x256xf32> to vector<1x24x256xf32>
    tpu.vector_store %arg6[%c0_11, %c0_12, %c0_13], %23 {strides = array<i32>} : memref<1x24x256xf32, #tpu.memory_space<vmem>>, vector<1x24x256xf32>,
    return
  }
  func.func @transform_0(%arg0: i32, %arg1: i32) -> (i32, i32, i32) {
    %c0_i32 = arith.constant 0 : i32
    %c0_i32_0 = arith.constant 0 : i32
    return %arg0, %c0_i32, %arg1 : i32, i32, i32
  }
  func.func @transform_1(%arg0: i32, %arg1: i32) -> (i32, i32) {
    %c0_i32 = arith.constant 0 : i32
    %c0_i32_0 = arith.constant 0 : i32
    %c0_i32_1 = arith.constant 0 : i32
    return %c0_i32, %c0_i32_0 : i32, i32
  }
  func.func @transform_2(%arg0: i32, %arg1: i32) -> (i32, i32) {
    %c0_i32 = arith.constant 0 : i32
    %c0_i32_0 = arith.constant 0 : i32
    %c0_i32_1 = arith.constant 0 : i32
    return %c0_i32, %c0_i32_0 : i32, i32
  }
  func.func @transform_3(%arg0: i32, %arg1: i32) -> (i32, i32) {
    %c0_i32 = arith.constant 0 : i32
    %c0_i32_0 = arith.constant 0 : i32
    %c0_i32_1 = arith.constant 0 : i32
    return %c0_i32, %c0_i32_0 : i32, i32
  }
  func.func @transform_4(%arg0: i32, %arg1: i32) -> (i32, i32, i32) {
    %c0_i32 = arith.constant 0 : i32
    %c0_i32_0 = arith.constant 0 : i32
    return %arg0, %c0_i32, %arg1 : i32, i32, i32
  }
}

</mosaic_0001>

<bundles_post_ra>
// kernel: tpu_custom_call.1
= control target key start
LH: loop header
LB: loop body
LE: loop exit
PB: predicated region body
PF: predicated region fallthrough
CT: control target
= control target key end

     0   :  { %9 = vsyncpa [#allocation3], 0  ;;  %s1070_s0 = inlined_call_operand.vmem [shape: f32[2,4,256], index: 0, kind: input, shape index: {}]   ;;  %s1071_s1 = inlined_call_operand.vmem [shape: f32[32,4], index: 1, kind: input, shape index: {}]   ;;  %s1072_s2 = inlined_call_operand.vmem [shape: f32[32,1], index: 2, kind: input, shape index: {}]   ;;  %s1073_s3 = inlined_call_operand.vmem [shape: f32[24,32], index: 3, kind: input, shape index: {}]   ;;  %s1074_s4 = inlined_call_operand.hbm [shape: f32[2,24,256], index: 4, kind: output, shape index: {}]  }
   0x1   :  { %11 = vsyncpa [#allocation3 + $0x1], 0  ;;  %s869_s15 = smov 0   ;;  %s871_s16 = smov 0  }
   0x2   :  { %s873_s17 = smov 0   ;;  %s875_s18 = smov 0  }
   0x3   :  { %s877_s19 = smov 0   ;;  %s879_s20 = smov 0  }
   0x4 LB: > { %s648_s21 = sadd.s32 4294967295, %s839_s20   ;;  %s649_s22 = sadd.s32 4294967294, %s839_s20   ;;  %s839_s20 = sphi %s879_s20, %s17_s20   ;;  %s835_s19 = sphi %s877_s19, %s1085_s19   ;;  %s831_s18 = sphi %s875_s18, %s1084_s18   ;;  %s827_s17 = sphi %s873_s17, %s1083_s17   ;;  %s823_s16 = sphi %s871_s16, %s1082_s16   ;;  %s819_s15 = sphi %s869_s15, %s1081_s15  }
   0x5   : > { %s29_s23 = sadd.s32 1, %s835_s19  ;;  %s129_s24 = sadd.s32 1, %s827_s17 }
   0x6   : > { %p31_p0 = scmp.ge.s32.totalorder %s29_s23, 2  ;;  %p139_p1 = scmp.ne.s32.totalorder %s827_s17, %s823_s16 }
   0x7   : > { %p140_p2 = scmp.eq.s32.totalorder %s648_s21, 1  ;;  %p145_p3 = scmp.ne.s32.totalorder %s823_s16, %s819_s15 }
   0x8   : > { %s1087_s23 = smov (%p31_p0, %s29_s23), 0  ;;  %p146_p5 = scmp.eq.s32.totalorder %s649_s22, 1 }
   0x9   : > { %p909_p4 = por %p140_p2, %p139_p1  ;;  %s124_s26 = ssub.s32 %s835_s19, %s1087_s23 }
   0xa   : > { %p652_p6 = scmp.ge.s32.totalorder %s839_s20, 1  ;;  %p127_p7 = scmp.eq.s32.totalorder %s124_s26, 0 }
   0xb   : > { %p916_p8 = por %p146_p5, %p145_p3  ;;  %p186_p9 = scmp.lt.s32.totalorder %s839_s20, 3 }
   0xc   : > { %s922_s28 = scalar_select %p127_p7, %s827_s17, %s129_s24  }
   0xd   : > { %p187_p10 = pnand %p652_p6, %p186_p9 }
   0xe   : > { %p217_p11 = scmp.lt.s32.totalorder (!%p187_p10), %s831_s18, 1  ;;  %s213_s14 = sand.u32 (!%p187_p10), 1, %s823_s16  }
   0xf   : > { %190 = sbr.rel (%p187_p10) target bundleno = 407 (0x197), region = 36 }
  0x10   : > { %s675_s21 = smul.u32 (!%p187_p10), 48, %s213_s14 }
  0x11   : > { %s676_s24 = smul.u32 (!%p187_p10), 48, %s831_s18 }
  0x12   : > { %s215_s22 = scalar_lea.vmem (!%p187_p10), [#allocation2], %s675_s21 }
  0x13   : > { %s565_s30 = scalar_lea.hbm (!%p187_p10), %s1074_s4, %s676_s24  ;;  %s566_s5 = sshll.u32 (!%p187_p10), %s215_s22, 4  ;;  %s567_s5 = int_to_ptr.vmem [resolvable:$true] %s566_s5 }
  0x14   : > { %v841_v0 = vmov 0   ;;  %v231_v1 = vld [vmem:[%s1072_s2] sm:$0xff]  ;;  %v233_v2 = vld [vmem:[%s1072_s2 + $0x10] sm:$0xff]  ;;  %s218_s7 = scalar_select %p217_p11, %s831_s18, 1  ;;  %v232_v4 = vld [vmem:[%s1072_s2 + $0x8] sm:$0xff]  ;;  %vm276_vm0 = vcmask 1043456  }
  0x15   : > { %736 = vset.pattern.permute.xlu1 %v841_v0  ;;  %735 = vset.pattern.permute.xlu0 %v841_v0  ;;  %v234_v5 = vld [vmem:[%s1072_s2 + $0x18] sm:$0xff]  ;;  %v227_v6 = vld [vmem:[%s1071_s1] sm:$0xff]  ;;  %vm263_vm1 = vcmask 31744   ;;  %v228_v9 = vld [vmem:[%s1071_s1 + $0x8] sm:$0xff]  ;;  %s568_s6 = sshll.u32 %s565_s30, 4  ;;  %s569_s6 = int_to_ptr.hbm [resolvable:$true] %s568_s6 }
  0x16   : > { %241 = vperm.xlu1 %736, %v231_v1   ;;  %251 = vperm.xlu0 %735, %v233_v2   ;;  %s674_s8 = sshll.u32 %s218_s7, 3  ;;  %v229_v10 = vld [vmem:[%s1071_s1 + $0x10] sm:$0xff]  ;;  %v230_v11 = vld [vmem:[%s1071_s1 + $0x18] sm:$0xff]  ;;  %s552_s7 = scalar_lea.sflag [#allocation3], %s213_s14 }
  0x17   : > { %s224_s11 = scalar_lea.vmem %s1070_s0, %s674_s8  ;;  %s775_s8 = sshra.s32 %s569_s6, 4  ;;  %s776_s8 = int_to_ptr.hbm [resolvable:$true] %s775_s8 }
  0x18   : > { %v238_v3 = vld [vmem:[%s224_s11] sm:$0xff]  ;;  %s777_s18 = scalar_lea.hbm %s776_s8, 48  ;;  %s781_s11 = scalar_lea.hbm %s1074_s4, 96 }
  0x19   : > { %260 = vst [vmem:[#allocation1] ss:$2 sm:$0xff] %v238_v3  ;;  %p778_p12 = scmp.ne.s32.totalorder %s776_s8, %s777_s18  ;;  %p782_p1 = scmp.lt.s32.totalorder %s776_s8, %s1074_s4 }
  0x1a   : > { %p783_p2 = scmp.lt.s32.totalorder %s781_s11, %s777_s18 }
  0x1b   : > { %p779_p13 = pnand %p778_p12, %p909_p4 }
  0x1c   : > { %p784_p3 = por %p783_p2, %p782_p1 }
  0x1d   : > { %p780_p0 = pneg %p779_p13 }
  0x1e   : > { %246 = vperm.xlu1 %736, %v232_v4   ;;  %256 = vperm.xlu0 %735, %v234_v5  }
  0x1f   : > { %p785_p5 = pnand %p784_p3, %p780_p0 }
  0x20   : > { %v261_v7 = vld.sshfl [vmem:[#allocation1] sm:$0xff pattern:$0x75316420]  ;;  %v262_v8 = vld.sshfl [vmem:[#allocation1 + $0x8] sm:$0xff pattern:$0x75316420] }
  0x21   : > { %655 = vmatpush.msk.msra.mxu0 %vm276_vm0, %v261_v7  ;;  %660 = vmatpush.msk.msra.mxu1 %vm276_vm0, %v262_v8 }
  0x22   : > { %656 = vmatmul.msk.f32.vlgmr.msra.gmra.mxu0 %vm263_vm1, %v227_v6  ;;  %661 = vmatmul.msk.f32.vlgmr.msra.gmra.mxu1 %vm263_vm1, %v227_v6 }
  0x2a   : > { %657 = vmatmul.msk.f32.gmra.mxu0 %vm263_vm1, %v228_v9  ;;  %662 = vmatmul.msk.f32.gmra.mxu1 %vm263_vm1, %v228_v9 }
  0x32   : > { %658 = vmatmul.msk.f32.gmra.mxu0 %vm263_vm1, %v229_v10  ;;  %663 = vmatmul.msk.f32.gmra.mxu1 %vm263_vm1, %v229_v10 }
  0x3a   : > { %659 = vmatmul.msk.f32.gmra.mxu0 %vm263_vm1, %v230_v11  ;;  %664 = vmatmul.msk.f32.gmra.mxu1 %vm263_vm1, %v230_v11 }
  0x88   : > { %v242_v12 = vpop.permute.xlu1 %241  ;;  %v252_v26 = vpop.permute.xlu0 %251 }
  0x90   : > { %v247_v15 = vpop.permute.xlu1 %246  ;;  %v257_v45 = vpop.permute.xlu0 %256 }
  0x9f   : > { %v298_v13 = vpop.f32.mrf.mxu0  ;;  %v327_v14 = vpop.f32.mrf.mxu1 }
  0xa0   : > { %v299_v18 = vadd.f32 %v298_v13, %v242_v12  ;;  %v328_v19 = vadd.f32 %v327_v14, %v242_v12 }
  0xa7   : > { %v301_v16 = vpop.f32.mrf.mxu0  ;;  %v330_v17 = vpop.f32.mrf.mxu1 }
  0xa8   : > { %v302_v20 = vadd.f32 %v301_v16, %v247_v15  ;;  %v331_v21 = vadd.f32 %v330_v17, %v247_v15 }
  0xaa   : > { %v339_v22 = vmax.f32 %v299_v18, %v302_v20  ;;  %v346_v23 = vmax.f32 %v328_v19, %v331_v21 }
  0xac   : > { %v340_v24 = vrot.slane %v339_v22, 4  ;;  %v347_v25 = vrot.slane %v346_v23, 4 }
  0xae   : > { %v341_v27 = vmax.f32 %v339_v22, %v340_v24  ;;  %v348_v28 = vmax.f32 %v346_v23, %v347_v25 }
  0xaf   : > { %v304_v29 = vpop.f32.mrf.mxu0  ;;  %v333_v30 = vpop.f32.mrf.mxu1 }
  0xb0   : > { %v342_v31 = vrot.slane %v341_v27, 2  ;;  %v349_v32 = vrot.slane %v348_v28, 2  ;;  %v305_v46 = vadd.f32 %v304_v29, %v252_v26  ;;  %v334_v47 = vadd.f32 %v333_v30, %v252_v26 }
  0xb2   : > { %v343_v33 = vmax.f32 %v341_v27, %v342_v31  ;;  %v350_v34 = vmax.f32 %v348_v28, %v349_v32 }
  0xb4   : > { %v344_v35 = vrot.slane %v343_v33, 1  ;;  %v351_v36 = vrot.slane %v350_v34, 1 }
  0xb6   : > { %v345_v37 = vmax.f32 %v343_v33, %v344_v35  ;;  %v352_v38 = vmax.f32 %v350_v34, %v351_v36 }
  0xb7   : > { %v307_v39 = vpop.f32.mrf.mxu0  ;;  %v336_v40 = vpop.f32.mrf.mxu1 }
  0xb8   : > { %v367_v41 = vsub.f32 %v299_v18, %v345_v37  ;;  %v369_v42 = vsub.f32 %v302_v20, %v345_v37  ;;  %v368_v43 = vsub.f32 %v328_v19, %v352_v38  ;;  %v370_v44 = vsub.f32 %v331_v21, %v352_v38 }
  0xb9   : > { %v308_v48 = vadd.f32 %v307_v39, %v257_v45  ;;  %v337_v49 = vadd.f32 %v336_v40, %v257_v45 }
  0xba   : > { %v375_v50 = vmul.f32 1.442695, %v367_v41  ;;  %v379_v51 = vmul.f32 1.442695, %v369_v42  ;;  %v377_v52 = vmul.f32 1.442695, %v368_v43 }
  0xbb   : > { %v381_v53 = vmul.f32 1.442695, %v370_v44  ;;  %v353_v54 = vmax.f32 %v305_v46, %v308_v48  ;;  %v360_v55 = vmax.f32 %v334_v47, %v337_v49 }
  0xbc   : > { %737 = vpow2.f32 %v375_v50 }
  0xbd   : > { %739 = vpow2.f32 %v379_v51  ;;  %v354_v56 = vrot.slane %v353_v54, 4  ;;  %v361_v57 = vrot.slane %v360_v55, 4 }
  0xbe   : > { %741 = vpow2.f32 %v377_v52 }
  0xbf   : > { %743 = vpow2.f32 %v381_v53  ;;  %v355_v58 = vmax.f32 %v353_v54, %v354_v56  ;;  %v362_v59 = vmax.f32 %v360_v55, %v361_v57 }
  0xc1   : > { %v356_v60 = vrot.slane %v355_v58, 2  ;;  %v363_v61 = vrot.slane %v362_v59, 2 }
  0xc2   : > { %v953_v62 = vpop.eup %737 }
  0xc3   : > { %v955_v63 = vpop.eup %739  ;;  %v357_v0 = vmax.f32 %v355_v58, %v356_v60  ;;  %v364_v1 = vmax.f32 %v362_v59, %v363_v61 }
  0xc4   : > { %v957_v2 = vpop.eup %741  ;;  %v391_v3 = vadd.f32 %v955_v63, %v953_v62 }
  0xc5   : > { %v961_v4 = vpop.eup %743  ;;  %v358_v5 = vrot.slane %v357_v0, 1  ;;  %v365_v6 = vrot.slane %v364_v1, 1 }
  0xc6   : > { %v392_v7 = vrot.slane %v391_v3, 4  ;;  %v398_v8 = vadd.f32 %v961_v4, %v957_v2 }
  0xc7   : > { %v359_v9 = vmax.f32 %v357_v0, %v358_v5  ;;  %v366_v10 = vmax.f32 %v364_v1, %v365_v6 }
  0xc8   : > { %v393_v11 = vadd.f32 %v392_v7, %v391_v3  ;;  %v399_v12 = vrot.slane %v398_v8, 4 }
  0xc9   : > { %v371_v13 = vsub.f32 %v305_v46, %v359_v9  ;;  %v373_v14 = vsub.f32 %v308_v48, %v359_v9  ;;  %v372_v15 = vsub.f32 %v334_v47, %v366_v10  ;;  %v374_v16 = vsub.f32 %v337_v49, %v366_v10 }
  0xca   : > { %v394_v17 = vrot.slane %v393_v11, 2  ;;  %v400_v18 = vadd.f32 %v399_v12, %v398_v8 }
  0xcb   : > { %v383_v19 = vmul.f32 1.442695, %v371_v13  ;;  %v387_v20 = vmul.f32 1.442695, %v373_v14  ;;  %v385_v21 = vmul.f32 1.442695, %v372_v15 }
  0xcc   : > { %v401_v22 = vrot.slane %v400_v18, 2  ;;  %v389_v23 = vmul.f32 1.442695, %v374_v16  ;;  %v395_v24 = vadd.f32 %v394_v17, %v393_v11 }
  0xcd   : > { %745 = vpow2.f32 %v383_v19 }
  0xce   : > { %747 = vpow2.f32 %v387_v20  ;;  %v402_v25 = vadd.f32 %v401_v22, %v400_v18  ;;  %v396_v26 = vrot.slane %v395_v24, 1 }
  0xcf   : > { %749 = vpow2.f32 %v385_v21 }
  0xd0   : > { %751 = vpow2.f32 %v389_v23  ;;  %v403_v28 = vrot.slane %v402_v25, 1  ;;  %v971_v31 = vadd.f32 %v396_v26, %v395_v24 }
  0xd2   : > { %v977_v34 = vadd.f32 %v403_v28, %v402_v25  ;;  %753 = vrcp.f32 %v971_v31  ;;  %vm424_vm2 = vweird.f32 %v971_v31  ;;  %v428_v59 = vand.u32 2147483647, %v971_v31 }
  0xd3   : > { %v965_v27 = vpop.eup %745  ;;  %v430_v1 = vand.u32 2147483648, %v971_v31 }
  0xd4   : > { %v967_v29 = vpop.eup %747  ;;  %755 = vrcp.f32 %v977_v34  ;;  %vm438_vm5 = vweird.f32 %v977_v34  ;;  %v442_v8 = vand.u32 2147483647, %v977_v34  ;;  %v444_v18 = vand.u32 2147483648, %v977_v34 }
  0xd5   : > { %v969_v30 = vpop.eup %749  ;;  %v405_v32 = vadd.f32 %v967_v29, %v965_v27  ;;  %v431_v21 = vor.u32 1.1754944e-38, %v430_v1  ;;  %vm429_vm15 = vcmp.eq.f32.partialorder %v428_v59, 8.507059e+37 }
  0xd6   : > { %v975_v33 = vpop.eup %751  ;;  %vm443_vm1 = vcmp.eq.f32.partialorder %v442_v8, 8.507059e+37 }
  0xd7   : > { %v406_v35 = vrot.slane %v405_v32, 4  ;;  %v412_v36 = vadd.f32 %v975_v33, %v969_v30 }
  0xd8   : > { %v754_v43 = vpop.eup %753 }
  0xd9   : > { %v407_v37 = vadd.f32 %v406_v35, %v405_v32  ;;  %v413_v38 = vrot.slane %v412_v36, 4  ;;  %v420_v49 = vmul.f32 %v754_v43, %v971_v31  ;;  %vm425_vm3 = vweird.f32 %v754_v43 }
  0xda   : > { %v983_v46 = vpop.eup %755  ;;  %vm997_vm8 = vmor %vm424_vm2, %vm425_vm3  ;;  %vm483_vm2 = vcmask 261120  }
  0xdb   : > { %v408_v39 = vrot.slane %v407_v37, 2  ;;  %v414_v40 = vadd.f32 %v413_v38, %v412_v36  ;;  %v434_v51 = vmul.f32 %v983_v46, %v977_v34  ;;  %v421_v52 = vsub.f32 1.0, %v420_v49 }
  0xdc   : > { %vm439_vm6 = vweird.f32 %v983_v46  ;;  %v445_v34 = vor.u32 1.1754944e-38, %v444_v18 }
  0xdd   : > { %v409_v41 = vadd.f32 %v408_v39, %v407_v37  ;;  %v415_v42 = vrot.slane %v414_v40, 2  ;;  %v435_v53 = vsub.f32 1.0, %v434_v51  ;;  %v422_v56 = vmul.f32 %v754_v43, %v421_v52  ;;  %vm1009_vm13 = vmor %vm438_vm5, %vm439_vm6  ;;  %v235_v39 = vld [vmem:[%s1073_s3] sm:$0xff] }
  0xdf   : > { %v410_v44 = vrot.slane %v409_v41, 1  ;;  %v416_v45 = vadd.f32 %v415_v42, %v414_v40  ;;  %v436_v60 = vmul.f32 %v983_v46, %v435_v53  ;;  %v423_v6 = vadd.f32 %v754_v43, %v422_v56 }
  0xe1   : > { %v417_v47 = vrot.slane %v416_v45, 1  ;;  %v411_v48 = vadd.f32 %v410_v44, %v409_v41  ;;  %v437_v12 = vadd.f32 %v983_v46, %v436_v60  ;;  %v427_v17 = vsel %vm997_vm8, %v754_v43, %v423_v6 }
  0xe2   : > { %v432_v26 = vsel %vm429_vm15, %v431_v21, %v427_v17 }
  0xe3   : > { %757 = vrcp.f32 %v411_v48  ;;  %v418_v50 = vadd.f32 %v417_v47, %v416_v45  ;;  %v458_v61 = vand.u32 2147483648, %v411_v48  ;;  %v456_v5 = vand.u32 2147483647, %v411_v48 }
  0xe4   : > { %vm452_vm7 = vweird.f32 %v411_v48  ;;  %v441_v28 = vsel %vm1009_vm13, %v983_v46, %v437_v12  ;;  %v475_v38 = vmul.f32 %v953_v62, %v432_v26  ;;  %v236_v62 = vld [vmem:[%s1073_s3 + $0x8] sm:$0xff] }
  0xe5   : > { %759 = vrcp.f32 %v418_v50  ;;  %v472_v10 = vand.u32 2147483648, %v418_v50  ;;  %v459_v13 = vor.u32 1.1754944e-38, %v458_v61  ;;  %v470_v15 = vand.u32 2147483647, %v418_v50 }
  0xe6   : > { %vm457_vm11 = vcmp.eq.f32.partialorder %v456_v5, 8.507059e+37  ;;  %vm466_vm12 = vweird.f32 %v418_v50  ;;  %v446_v36 = vsel %vm443_vm1, %v445_v34, %v441_v28 }
  0xe7   : > { %v473_v24 = vor.u32 1.1754944e-38, %v472_v10  ;;  %vm471_vm0 = vcmp.eq.f32.partialorder %v470_v15, 8.507059e+37 }
  0xe9   : > { %v758_v54 = vpop.eup %757 }
  0xea   : > { %v448_v55 = vmul.f32 %v758_v54, %v411_v48  ;;  %vm453_vm4 = vweird.f32 %v758_v54 }
  0xeb   : > { %v760_v57 = vpop.eup %759  ;;  %vm454_vm9 = vmor %vm452_vm7, %vm453_vm4 }
  0xec   : > { %v449_v58 = vsub.f32 1.0, %v448_v55  ;;  %v462_v0 = vmul.f32 %v760_v57, %v418_v50  ;;  %vm467_vm10 = vweird.f32 %v760_v57 }
  0xed   : > { %vm468_vm14 = vmor %vm466_vm12, %vm467_vm10 }
  0xee   : > { %v450_v3 = vmul.f32 %v758_v54, %v449_v58  ;;  %v463_v7 = vsub.f32 1.0, %v462_v0 }
  0xf0   : > { %v451_v9 = vadd.f32 %v758_v54, %v450_v3  ;;  %v464_v14 = vmul.f32 %v760_v57, %v463_v7 }
  0xf2   : > { %v455_v16 = vsel %vm454_vm9, %v758_v54, %v451_v9  ;;  %v465_v20 = vadd.f32 %v760_v57, %v464_v14 }
  0xf3   : > { %v460_v19 = vsel %vm457_vm11, %v459_v13, %v455_v16 }
  0xf4   : > { %v481_v23 = vmul.f32 %v967_v29, %v460_v19  ;;  %v469_v25 = vsel %vm468_vm14, %v760_v57, %v465_v20  ;;  %v479_v32 = vmul.f32 %v965_v27, %v460_v19  ;;  %v477_v29 = vmul.f32 %v955_v63, %v432_v26 }
  0xf5   : > { %v474_v31 = vsel %vm471_vm0, %v473_v24, %v469_v25  ;;  %v478_v27 = vmul.f32 %v961_v4, %v446_v36  ;;  %v476_v63 = vmul.f32 %v957_v2, %v446_v36 }
  0xf6   : > { %505 = vmatpush.msra.mxu2 %v481_v23  ;;  %v482_v35 = vmul.f32 %v975_v33, %v474_v31  ;;  %v480_v37 = vmul.f32 %v969_v30, %v474_v31  ;;  %v237_v30 = vld [vmem:[%s1073_s3 + $0x10] sm:$0xff] }
  0xf8   : > { %506 = vmatpush.msra.mxu2 %v479_v32  ;;  %531 = vmatpush.msra.mxu3 %v482_v35 }
  0xfa   : > { %507 = vmatpush.msra.mxu2 %v477_v29  ;;  %532 = vmatpush.msra.mxu3 %v480_v37 }
  0xfc   : > { %508 = vmatpush.msra.mxu2 %v475_v38  ;;  %533 = vmatpush.msra.mxu3 %v478_v27 }
  0xfd   : > { %665 = vmatmul.msk.f32.vlgmr.msra.gmra.mxu2 %vm483_vm2, %v235_v39 }
  0xfe   : > { %534 = vmatpush.msra.mxu3 %v476_v63 }
  0xff   : > { %668 = vmatmul.msk.f32.vlgmr.msra.gmra.mxu3 %vm483_vm2, %v235_v39 }
 0x105   : > { %666 = vmatmul.msk.f32.gmra.mxu2 %vm483_vm2, %v236_v62 }
 0x107   : > { %669 = vmatmul.msk.f32.gmra.mxu3 %vm483_vm2, %v236_v62 }
 0x10d   : > { %667 = vmatmul.msk.f32.gmra.mxu2 %vm483_vm2, %v237_v30 }
 0x10f   : > { %670 = vmatmul.msk.f32.gmra.mxu3 %vm483_vm2, %v237_v30 }
 0x180   : > { %v510_v4 = vpop.f32.mrf.mxu2 }
 0x181   : > { %545 = vst [vmem:[%s215_s22] sm:$0xff] %v510_v4 }
 0x182   : > { %v536_v2 = vpop.f32.mrf.mxu3 }
 0x183   : > { %546 = vst [vmem:[%s215_s22 + $0x8] sm:$0xff] %v536_v2 }
 0x188   : > { %v513_v33 = vpop.f32.mrf.mxu2 }
 0x189   : > { %547 = vst [vmem:[%s215_s22 + $0x10] sm:$0xff] %v513_v33 }
 0x18a   : > { %v539_v40 = vpop.f32.mrf.mxu3 }
 0x18b   : > { %548 = vst [vmem:[%s215_s22 + $0x18] sm:$0xff] %v539_v40 }
 0x190   : > { %v516_v41 = vpop.f32.mrf.mxu2 }
 0x191   : > { %549 = vst [vmem:[%s215_s22 + $0x20] sm:$0xff] %v516_v41 }
 0x192   : > { %v542_v42 = vpop.f32.mrf.mxu3 }
 0x193   : > { %550 = vst [vmem:[%s215_s22 + $0x28] sm:$0xff] %v542_v42 }
 0x194   : > { %788 = shalt.err (!%p785_p5)
}
 0x195   : > { %s842_s14 = smov 256   ;;  %s843_s21 = smov 16  }
 0x196   : > { %677 = dma.vmem_to_hbm [thread:$0]  (%p909_p4), %s567_s5, 768, %s569_s6, %s552_s7, %s842_s14, %s842_s14, %s843_s21  }
 0x197 PF: > { %p683_p6 = scmp.ge.s32.totalorder %s839_s20, 2  ;;  %s583_s22 = sand.u32 1, %s819_s15  }
 0x198   : > { %s584_s24 = scalar_lea.sflag [#allocation3], %s583_s22 }
 0x199   : > { %p680_p7 = pnand %p683_p6, %p916_p8 }
 0x19b   : > { %p681_p9 = pneg %p680_p7 }
 0x19d   : > { %814 = dma.done.wait (%p681_p9), %s584_s24, 768  }
 0x19e   : > { %816 = vsyncadd (%p681_p9), %s584_s24, 4294966528  ;;  %s17_s20 = sadd.s32 1, %s839_s20   ;;  %s1081_s15 = smov %s823_s16 }
 0x19f   : > { %p14_p10 = scmp.ge.s32.totalorder %s17_s20, 4   ;;  %s1082_s16 = smov %s827_s17 }
 0x1a0   : > { %s1083_s17 = smov %s922_s28  ;;  %s1084_s18 = smov %s835_s19 }
 0x1a1   : > { %s1085_s19 = smov %s1087_s23  ;;  %16 = sbr.rel (!%p14_p10) target bundleno = 4 (0x4), region = 71 }
 0x1a6   :  { %590 = vsyncpa [#allocation3], 1 }
 0x1a7   :  { %592 = vsyncpa [#allocation3 + $0x1], 1 }

</bundles_post_ra>
